<compile_context>
chip_gen: v7x
topology: tpu7x:2x2x1
jax: 0.10.0
libtpu: 0.0.40
codegen_flags: <defaults>
</compile_context>

<pallas_src>
import math

import jax
import jax.numpy as jnp
from jax.experimental import pallas as pl
from jax.experimental.pallas import tpu as pltpu

_INV_SQRT2 = 1.0 / math.sqrt(2.0)


def _erf_gelu(h):
    # PyTorch nn.GELU() default = exact erf formulation (kept for bit-fidelity).
    return 0.5 * h * (1.0 + jax.lax.erf(h * _INV_SQRT2))


# ----------------------------------------------------------------------------
# Kernel bodies
# ----------------------------------------------------------------------------
def _res_adapter_tokens_kernel(x_ref, w1_ref, b1_ref, w2_ref, b2_ref, o_ref):
    """Token-major tile: out = x + GELU(x @ W1 + b1) @ W2 + b2.  x tile: (TM, D)."""
    x = x_ref[...]                                   # (TM, D) in I/O dtype
    cdt = w1_ref.dtype                               # matmul operand dtype (f32 or bf16)
    h = jnp.dot(x.astype(cdt), w1_ref[...],
                preferred_element_type=jnp.float32)  # (TM, A), f32 accumulation
    h = _erf_gelu(h + b1_ref[...])                   # bias/GELU in f32
    y = jnp.dot(h.astype(cdt), w2_ref[...],
                preferred_element_type=jnp.float32)  # (TM, D)
    # Slim epilogue: single cast of the adapter branch, residual add in I/O dtype.
    adapter = (y + b2_ref[...]).astype(o_ref.dtype)
    o_ref[...] = x + adapter


def _res_adapter_nchw_kernel(x_ref, w1t_ref, b1_ref, w2t_ref, b2_ref, o_ref):
    """Channel-first tile: x tile is (C, TS); the NCHW permute is folded into the
    contraction.  Weights arrive pre-transposed (W1^T: (A,C), W2^T: (C,A)) so both
    matmuls are canonical LHS-dim-1 x RHS-dim-0 contractions (no per-step relayout)."""
    x = x_ref[...]                                   # (C, TS) in I/O dtype
    cdt = w1t_ref.dtype
    # h = W1^T @ x : (A, C) @ (C, TS) -> (A, TS)
    h = jnp.dot(w1t_ref[...], x.astype(cdt),
                preferred_element_type=jnp.float32)
    h = _erf_gelu(h + b1_ref[...])                   # b1 is (A, 1), broadcasts over lanes
    # y = W2^T @ h : (C, A) @ (A, TS) -> (C, TS)
    y = jnp.dot(w2t_ref[...], h.astype(cdt),
                preferred_element_type=jnp.float32)
    adapter = (y + b2_ref[...]).astype(o_ref.dtype)  # b2 is (C, 1)
    o_ref[...] = x + adapter


# ----------------------------------------------------------------------------
# Chip-aware tiling / VMEM helpers
# ----------------------------------------------------------------------------
_CHIP_BUDGETS = None


def _chip_budgets():
    """(tile_budget_bytes, vmem_limit_cap_bytes, preferred_tile_rows), per chip gen."""
    global _CHIP_BUDGETS
    if _CHIP_BUDGETS is None:
        vmem = 64 << 20                                # conservative default (v7x-sized)
        try:
            info = pltpu.get_tpu_info()
            cap = getattr(info, "vmem_capacity_bytes", None)
            if cap:
                vmem = int(cap)
        except Exception:
            pass
        if vmem >= (96 << 20):
            # v5e / v6e: 128 MiB VMEM per TensorCore -> bigger tiles amortize the
            # ~0.35 us per-grid-step overhead on this bandwidth-bound kernel.
            _CHIP_BUDGETS = (64 << 20, 100 << 20, 1024)
        else:
            # v7x (64 MiB / TC) or unknown: leave headroom for Mosaic internal
            # scratch / MXU result buffers; never request the whole VMEM.
            _CHIP_BUDGETS = (24 << 20, 48 << 20, 512)
    return _CHIP_BUDGETS


def _sublane_granularity(dtype):
    bits = jnp.dtype(dtype).itemsize * 8
    return max(8, 256 // bits)        # 8 for f32, 16 for bf16, 32 for int8/fp8


def _pick_tile(extent, feat, io_itemsize, cdt_itemsize, *, preferred, granularity, budget):
    """Largest tile along `extent` (multiple of `granularity`, <= preferred) whose
    double-buffered in+out tiles PLUS the f32 compute intermediates stay under the
    budget; uses the full extent when it already fits (full-dim blocks are legal)."""
    # Per tile element: 2x in + 2x out buffers, f32 matmul output + f32 adapter temp,
    # and the compute-dtype cast of x (zero when io dtype == compute dtype, but
    # budgeted conservatively).
    per_elem = feat * (4 * io_itemsize + 8 + cdt_itemsize)
    cap = max(granularity, (budget // per_elem) // granularity * granularity)
    tile = min(preferred, cap)
    if extent <= tile:
        return extent                  # full-extent block
    if tile >= 256:
        tile = (tile // 256) * 256     # match the 256-tall MXU M dim on v6e/v7x
    return tile


def _vmem_limit_bytes(tile, feat, io_itemsize, cdt_itemsize, w_bytes, cap):
    io_tiles = 4 * tile * feat * io_itemsize           # 2 bufs in + 2 bufs out
    f32_temps = tile * feat * (8 + cdt_itemsize)       # f32 y + f32 adapter + cdt cast
    need = io_tiles + f32_temps + 2 * w_bytes + (6 << 20)   # weights (2 bufs) + headroom
    return int(min(max(need, 16 << 20), cap))


# ----------------------------------------------------------------------------
# pallas_call wrappers
# ----------------------------------------------------------------------------
def _res_adapter_tokens(x2d, w1, b1, w2, b2, *, preferred_tile=None):
    """x2d: (M, D) in I/O dtype; w1: (D, A); b1: (A,); w2: (A, D); b2: (D,) (f32 biases)."""
    M, D = x2d.shape
    A = w1.shape[1]
    io_item = jnp.dtype(x2d.dtype).itemsize
    cdt_item = jnp.dtype(w1.dtype).itemsize
    tile_budget, vmem_cap, chip_pref = _chip_budgets()
    preferred = chip_pref if preferred_tile is None else preferred_tile
    tm = _pick_tile(M, D, io_item, cdt_item, preferred=preferred,
                    granularity=_sublane_granularity(x2d.dtype), budget=tile_budget)
    grid = (pl.cdiv(M, tm),)
    w_bytes = (w1.size * cdt_item + w2.size * cdt_item + 4 * (b1.size + b2.size))
    # TODO(synk): the resident weights/biases could be single-buffered
    # (pipeline_mode=pl.Buffered(1)); left default-buffered here for API safety —
    # the extra VMEM is already accounted for in _vmem_limit_bytes and is tiny.
    return pl.pallas_call(
        _res_adapter_tokens_kernel,
        out_shape=jax.ShapeDtypeStruct((M, D), x2d.dtype),
        grid_spec=pltpu.PrefetchScalarGridSpec(
            num_scalar_prefetch=0,
            grid=grid,
            in_specs=[
                pl.BlockSpec((tm, D), lambda i: (i, 0)),   # x tile
                pl.BlockSpec((D, A), lambda i: (0, 0)),    # W1 (resident)
                pl.BlockSpec((1, A), lambda i: (0, 0)),    # b1
                pl.BlockSpec((A, D), lambda i: (0, 0)),    # W2
                pl.BlockSpec((1, D), lambda i: (0, 0)),    # b2
            ],
            out_specs=pl.BlockSpec((tm, D), lambda i: (i, 0)),
        ),
        compiler_params=pltpu.CompilerParams(
            dimension_semantics=("parallel",),
            vmem_limit_bytes=_vmem_limit_bytes(tm, D, io_item, cdt_item, w_bytes, vmem_cap),
        ),
    )(x2d, w1, b1.reshape(1, A), w2, b2.reshape(1, D))


def _res_adapter_nchw(x3d, w1t, b1, w2t, b2, *, preferred_tile=None):
    """x3d: (B, C, S) channel-first in I/O dtype (S = N1*N2).
    w1t: (A, C) = W1^T; w2t: (C, A) = W2^T (pre-transposed in the wrapper)."""
    B, C, S = x3d.shape
    A = w1t.shape[0]
    io_item = jnp.dtype(x3d.dtype).itemsize
    cdt_item = jnp.dtype(w1t.dtype).itemsize
    tile_budget, vmem_cap, chip_pref = _chip_budgets()
    preferred = chip_pref if preferred_tile is None else preferred_tile
    ts = _pick_tile(S, C, io_item, cdt_item, preferred=preferred,
                    granularity=128, budget=tile_budget)   # lane (last) axis granularity
    grid = (B, pl.cdiv(S, ts))
    w_bytes = (w1t.size * cdt_item + w2t.size * cdt_item + 4 * (b1.size + b2.size))
    # TODO(synk): on v7x verify both "parallel" axes shard across the 2 TensorCores;
    # switch the outer axis to pltpu.CORE_PARALLEL if a trace shows single-TC execution.
    return pl.pallas_call(
        _res_adapter_nchw_kernel,
        out_shape=jax.ShapeDtypeStruct((B, C, S), x3d.dtype),
        grid_spec=pltpu.PrefetchScalarGridSpec(
            num_scalar_prefetch=0,
            grid=grid,
            in_specs=[
                pl.BlockSpec((None, C, ts), lambda b, s: (b, 0, s)),  # x tile (C, TS)
                pl.BlockSpec((A, C), lambda b, s: (0, 0)),            # W1^T (resident)
                pl.BlockSpec((A, 1), lambda b, s: (0, 0)),            # b1 (column)
                pl.BlockSpec((C, A), lambda b, s: (0, 0)),            # W2^T
                pl.BlockSpec((C, 1), lambda b, s: (0, 0)),            # b2 (column)
            ],
            out_specs=pl.BlockSpec((None, C, ts), lambda b, s: (b, 0, s)),
        ),
        compiler_params=pltpu.CompilerParams(
            dimension_semantics=("parallel", "parallel"),
            vmem_limit_bytes=_vmem_limit_bytes(ts, C, io_item, cdt_item, w_bytes, vmem_cap),
        ),
    )(x3d, w1t, b1.reshape(A, 1), w2t, b2.reshape(C, 1))


# ----------------------------------------------------------------------------
# Public forward
# ----------------------------------------------------------------------------
def res_adapter_forward(x, params, *, preferred_tile=None):
    """Full ResAdapter.forward.  x: (B, C, N1, N2) NCHW or (B, S, dim)."""
    w1, b1, w2, b2 = params
    # bf16 inputs -> bf16 matmul operands (f32 accumulation); otherwise f32 matmuls.
    compute_dtype = jnp.bfloat16 if x.dtype == jnp.bfloat16 else jnp.float32
    w1c = w1.astype(compute_dtype)
    w2c = w2.astype(compute_dtype)
    b1f = b1.astype(jnp.float32)
    b2f = b2.astype(jnp.float32)

    if x.ndim == 4:
        B, C, N1, N2 = x.shape
        x3 = x.reshape(B, C, N1 * N2)        # free reshape; no transpose, no copy
        # Pre-transpose the tiny weights once in the wrapper so the kernel's matmuls
        # are canonical (no transposed-LHS contraction / per-step weight relayout).
        out = _res_adapter_nchw(x3, w1c.T, b1f, w2c.T, b2f, preferred_tile=preferred_tile)
        return out.reshape(B, C, N1, N2)
    elif x.ndim == 3:
        B, S, D = x.shape
        out = _res_adapter_tokens(x.reshape(B * S, D), w1c, b1f, w2c, b2f,
                                  preferred_tile=preferred_tile)
        return out.reshape(B, S, D)
    else:
        raise ValueError(f"unsupported input rank {x.ndim}")


def init_res_adapter_params(key, dim, adapter_length=32):
    """Deterministic init mirroring the PyTorch module:
       xavier_uniform_ for ln1/ln2 weights, normal(std=1e-6) for biases.
       (adapter_weight is None in the default tuner_cfg -> no scaling params.)"""
    k1, k2, k3, k4 = jax.random.split(key, 4)
    bound1 = math.sqrt(6.0 / (dim + adapter_length))
    w1 = jax.random.uniform(k1, (dim, adapter_length), jnp.float32, -bound1, bound1)
    b1 = 1e-6 * jax.random.normal(k2, (adapter_length,), jnp.float32)
    bound2 = math.sqrt(6.0 / (adapter_length + dim))
    w2 = jax.random.uniform(k3, (adapter_length, dim), jnp.float32, -bound2, bound2)
    b2 = 1e-6 * jax.random.normal(k4, (dim,), jnp.float32)
    return (w1, b1, w2, b2)
    # TODO(synk): adapter_weight variants ('gate', 'scale', 'scalar_*', ...) are not
    # exercised by the default config; only the None path is implemented in-kernel.


def _reference_forward(x, params):
    """Pure-JAX (f32) reference of the PyTorch forward for correctness checking."""
    w1, b1, w2, b2 = params
    xf = x.astype(jnp.float32)
    if x.ndim == 4:
        B, C, N1, N2 = x.shape
        t = jnp.transpose(xf.reshape(B, C, N1 * N2), (0, 2, 1))
        h = jax.nn.gelu(t @ w1 + b1, approximate=False)
        a = h @ w2 + b2
        a = jnp.transpose(a, (0, 2, 1)).reshape(B, C, N1, N2)
        return (xf + a).astype(x.dtype)
    else:
        h = jax.nn.gelu(xf @ w1 + b1, approximate=False)
        return (xf + (h @ w2 + b2)).astype(x.dtype)


if __name__ == "__main__":
    key = jax.random.PRNGKey(0)
    k_x4, k_x3, k_xr, k_p = jax.random.split(key, 4)

    dim, adapter_length = 32, 32
    params = init_res_adapter_params(k_p, dim, adapter_length)
    fwd = jax.jit(res_adapter_forward, static_argnames=("preferred_tile",))

    # Tolerances: the f32 matmuls use default (production) MXU precision inside the
    # kernel, which may differ slightly from XLA's default f32 dot lowering, so the
    # f32 checks use a moderate tolerance; bf16 I/O is looser by construction.
    F32_TOL = dict(atol=3e-2, rtol=3e-2)

    # 1) 4-D NCHW input, f32 (channels == dim)
    x4 = jax.random.normal(k_x4, (2, dim, 8, 8), jnp.float32)
    out4 = jax.block_until_ready(fwd(x4, params))
    ref4 = _reference_forward(x4, params)
    assert out4.shape == x4.shape and out4.dtype == x4.dtype
    assert jnp.allclose(out4, ref4, **F32_TOL), "4-D f32 mismatch vs reference"

    # 2) 3-D (B, S, dim) input, f32
    x3 = jax.random.normal(k_x3, (2, 8, dim), jnp.float32)
    out3 = jax.block_until_ready(fwd(x3, params))
    ref3 = _reference_forward(x3, params)
    assert out3.shape == x3.shape and out3.dtype == x3.dtype
    assert jnp.allclose(out3, ref3, **F32_TOL), "3-D f32 mismatch vs reference"

    # 3) 3-D input with a token count NOT divisible by the tile (partial tail block)
    xr = jax.random.normal(k_xr, (2, 10, dim), jnp.float32)     # M = 20, tm forced to 8
    outr = jax.block_until_ready(fwd(xr, params, preferred_tile=8))
    refr = _reference_forward(xr, params)
    assert outr.shape == xr.shape
    assert jnp.allclose(outr, refr, **F32_TOL), "partial-tail-tile mismatch vs reference"

    # 4) 4-D NCHW input, bf16 I/O (bf16 matmul operands, f32 accumulation)
    x4b = x4.astype(jnp.bfloat16)
    out4b = jax.block_until_ready(fwd(x4b, params))
    ref4b = _reference_forward(x4b, params)
    assert out4b.shape == x4b.shape and out4b.dtype == jnp.bfloat16
    assert jnp.allclose(out4b.astype(jnp.float32), ref4b.astype(jnp.float32),
                        atol=1e-1, rtol=5e-2), "4-D bf16 mismatch vs reference"

    print("KERNEL_OK")
</pallas_src>

<mosaic_0001>
module attributes {stable_mosaic.version = 11 : i64} {
  func.func @_res_adapter_nchw_kernel(%arg0: i32, %arg1: i32, %arg2: memref<1x32x64xf32, #tpu.memory_space<vmem>>, %arg3: memref<32x32xf32, #tpu.memory_space<vmem>>, %arg4: memref<32x1xf32, #tpu.memory_space<vmem>>, %arg5: memref<32x32xf32, #tpu.memory_space<vmem>>, %arg6: memref<32x1xf32, #tpu.memory_space<vmem>>, %arg7: memref<1x32x64xf32, #tpu.memory_space<vmem>>) attributes {dimension_semantics = [#tpu.dimension_semantics<parallel>, #tpu.dimension_semantics<parallel>], iteration_bounds = array<i64: 2, 1>, scalar_prefetch = 0 : i64, scratch_operands = 0 : i64, tpu.core_type = #tpu.core_type<tc>, window_params = [{transform_indices = @transform_0, window_bounds = array<i64: 1, 32, 64>}, {pipeline_mode = #tpu.pipeline_mode<synchronous>, transform_indices = @transform_1, window_bounds = array<i64: 32, 32>}, {pipeline_mode = #tpu.pipeline_mode<synchronous>, transform_indices = @transform_2, window_bounds = array<i64: 32, 1>}, {pipeline_mode = #tpu.pipeline_mode<synchronous>, transform_indices = @transform_3, window_bounds = array<i64: 32, 32>}, {pipeline_mode = #tpu.pipeline_mode<synchronous>, transform_indices = @transform_4, window_bounds = array<i64: 32, 1>}, {transform_indices = @transform_5, window_bounds = array<i64: 1, 32, 64>}]} {
    %c0 = arith.constant 0 : index
    %c0_0 = arith.constant 0 : index
    %c0_1 = arith.constant 0 : index
    %0 = vector.load %arg2[%c0, %c0_0, %c0_1] : memref<1x32x64xf32, #tpu.memory_space<vmem>>, vector<1x32x64xf32>
    %1 = vector.shape_cast %0 : vector<1x32x64xf32> to vector<32x64xf32>
    %c0_2 = arith.constant 0 : index
    %c0_3 = arith.constant 0 : index
    %2 = vector.load %arg3[%c0_2, %c0_3] : memref<32x32xf32, #tpu.memory_space<vmem>>, vector<32x32xf32>
    %cst = arith.constant dense<0.000000e+00> : vector<32x64xf32>
    %3 = tpu.matmul %2, %1, %cst {dimension_numbers = #tpu.dot_dimension_numbers<[1], [0], [0], [1], [0, 0, 1, 1], [], []>} : vector<32x32xf32>, vector<32x64xf32>, vector<32x64xf32> -> vector<32x64xf32>
    %c0_4 = arith.constant 0 : index
    %c0_5 = arith.constant 0 : index
    %4 = vector.load %arg4[%c0_4, %c0_5] : memref<32x1xf32, #tpu.memory_space<vmem>>, vector<32x1xf32>
    %5 = vector.broadcast %4 : vector<32x1xf32> to vector<32x64xf32>
    %6 = arith.addf %3, %5 : vector<32x64xf32>
    %cst_6 = arith.constant 5.000000e-01 : f32
    %7 = vector.broadcast %cst_6 : f32 to vector<32x64xf32>
    %8 = arith.mulf %7, %6 : vector<32x64xf32>
    %cst_7 = arith.constant 0.707106769 : f32
    %9 = vector.broadcast %cst_7 : f32 to vector<32x64xf32>
    %10 = arith.mulf %6, %9 : vector<32x64xf32>
    %11 = math.erf %10 : vector<32x64xf32>
    %cst_8 = arith.constant 1.000000e+00 : f32
    %12 = vector.broadcast %cst_8 : f32 to vector<32x64xf32>
    %13 = arith.addf %12, %11 : vector<32x64xf32>
    %14 = arith.mulf %8, %13 : vector<32x64xf32>
    %c0_9 = arith.constant 0 : index
    %c0_10 = arith.constant 0 : index
    %15 = vector.load %arg5[%c0_9, %c0_10] : memref<32x32xf32, #tpu.memory_space<vmem>>, vector<32x32xf32>
    %cst_11 = arith.constant dense<0.000000e+00> : vector<32x64xf32>
    %16 = tpu.matmul %15, %14, %cst_11 {dimension_numbers = #tpu.dot_dimension_numbers<[1], [0], [0], [1], [0, 0, 1, 1], [], []>} : vector<32x32xf32>, vector<32x64xf32>, vector<32x64xf32> -> vector<32x64xf32>
    %c0_12 = arith.constant 0 : index
    %c0_13 = arith.constant 0 : index
    %17 = vector.load %arg6[%c0_12, %c0_13] : memref<32x1xf32, #tpu.memory_space<vmem>>, vector<32x1xf32>
    %18 = vector.broadcast %17 : vector<32x1xf32> to vector<32x64xf32>
    %19 = arith.addf %16, %18 : vector<32x64xf32>
    %20 = arith.addf %1, %19 : vector<32x64xf32>
    %c0_14 = arith.constant 0 : index
    %c0_15 = arith.constant 0 : index
    %c0_16 = arith.constant 0 : index
    %21 = vector.load %arg7[%c0_14, %c0_15, %c0_16] : memref<1x32x64xf32, #tpu.memory_space<vmem>>, vector<1x32x64xf32>
    %22 = vector.shape_cast %21 : vector<1x32x64xf32> to vector<32x64xf32>
    %23 = vector.shape_cast %20 : vector<32x64xf32> to vector<1x32x64xf32>
    tpu.vector_store %arg7[%c0_14, %c0_15, %c0_16], %23 {strides = array<i32>} : memref<1x32x64xf32, #tpu.memory_space<vmem>>, vector<1x32x64xf32>,
    return
  }
  func.func @transform_0(%arg0: i32, %arg1: i32) -> (i32, i32, i32) {
    %c0_i32 = arith.constant 0 : i32
    %c0_i32_0 = arith.constant 0 : i32
    return %arg0, %c0_i32, %arg1 : i32, i32, i32
  }
  func.func @transform_1(%arg0: i32, %arg1: i32) -> (i32, i32) {
    %c0_i32 = arith.constant 0 : i32
    %c0_i32_0 = arith.constant 0 : i32
    %c0_i32_1 = arith.constant 0 : i32
    return %c0_i32, %c0_i32_0 : i32, i32
  }
  func.func @transform_2(%arg0: i32, %arg1: i32) -> (i32, i32) {
    %c0_i32 = arith.constant 0 : i32
    %c0_i32_0 = arith.constant 0 : i32
    %c0_i32_1 = arith.constant 0 : i32
    return %c0_i32, %c0_i32_0 : i32, i32
  }
  func.func @transform_3(%arg0: i32, %arg1: i32) -> (i32, i32) {
    %c0_i32 = arith.constant 0 : i32
    %c0_i32_0 = arith.constant 0 : i32
    %c0_i32_1 = arith.constant 0 : i32
    return %c0_i32, %c0_i32_0 : i32, i32
  }
  func.func @transform_4(%arg0: i32, %arg1: i32) -> (i32, i32) {
    %c0_i32 = arith.constant 0 : i32
    %c0_i32_0 = arith.constant 0 : i32
    %c0_i32_1 = arith.constant 0 : i32
    return %c0_i32, %c0_i32_0 : i32, i32
  }
  func.func @transform_5(%arg0: i32, %arg1: i32) -> (i32, i32, i32) {
    %c0_i32 = arith.constant 0 : i32
    %c0_i32_0 = arith.constant 0 : i32
    return %arg0, %c0_i32, %arg1 : i32, i32, i32
  }
}

</mosaic_0001>

<bundles_post_ra>
// kernel: res_adapter_forward.1
= control target key start
LH: loop header
LB: loop body
LE: loop exit
PB: predicated region body
PF: predicated region fallthrough
CT: control target
= control target key end

     0   :  { %s794_s18 = smov 0   ;;  %s796_s19 = smov 0   ;;  %s906_s0 = inlined_call_operand.vmem [shape: f32[2,32,64], index: 0, kind: input, shape index: {}]   ;;  %s907_s1 = inlined_call_operand.vmem [shape: f32[32,32], index: 1, kind: input, shape index: {}]   ;;  %s908_s2 = inlined_call_operand.vmem [shape: f32[32,1], index: 2, kind: input, shape index: {}]   ;;  %s909_s3 = inlined_call_operand.vmem [shape: f32[32,32], index: 3, kind: input, shape index: {}]   ;;  %s910_s4 = inlined_call_operand.vmem [shape: f32[32,1], index: 4, kind: input, shape index: {}]   ;;  %s911_s5 = inlined_call_operand.vmem [shape: f32[2,32,64], index: 5, kind: output, shape index: {}]  }
   0x1   :  { %s798_s20 = smov 0  }
   0x2 LB: > { %s27_s21 = sadd.s32 1, %s757_s19  ;;  %p627_p0 = scmp.ge.s32.totalorder %s761_s20, 1  ;;  %s761_s20 = sphi %s798_s20, %s15_s20   ;;  %s757_s19 = sphi %s796_s19, %s913_s19   ;;  %s753_s18 = sphi %s794_s18, %s912_s18  }
   0x3   : > { %p29_p1 = scmp.ge.s32.totalorder %s27_s21, 2  ;;  %p206_p2 = scmp.lt.s32.totalorder %s761_s20, 3 }
   0x5   : > { %s915_s21 = smov (%p29_p1, %s27_s21), 0  ;;  %p207_p3 = pnand %p627_p0, %p206_p2 }
   0x6   : > { %p240_p4 = scmp.lt.s32.totalorder (!%p207_p3), %s753_s18, 1  ;;  %v260_v0 = vld [vmem:[%s907_s1] sm:$0xff] (!%p207_p3)  ;;  %vm288_vm0 = vcmask (!%p207_p3), 261120   ;;  %v763_v1 = vmov (!%p207_p3), 0   ;;  %v266_v3 = vld [vmem:[%s908_s2 + $0x10] sm:$0xff] (!%p207_p3)  ;;  %v265_v4 = vld [vmem:[%s908_s2 + $0x8] sm:$0xff] (!%p207_p3) }
   0x7   : > { %210 = sbr.rel (%p207_p3) target bundleno = 492 (0x1ec), region = 40  ;;  %668 = vmatprep.mubr.msk.f32.mxu0 (!%p207_p3), %vm288_vm0, %v260_v0  ;;  %729 = vset.pattern.permute.xlu0 (!%p207_p3), %v763_v1  ;;  %v264_v2 = vld [vmem:[%s908_s2] sm:$0xff] (!%p207_p3)  ;;  %v267_v5 = vld [vmem:[%s908_s2 + $0x18] sm:$0xff] (!%p207_p3)  ;;  %v411_v13 = vld [vmem:[%s910_s4 + $0x8] sm:$0xff] (!%p207_p3)  ;;  %vm535_vm1 = vcmask (!%p207_p3), 523264  }
   0x8   : > { %270 = vperm.xlu0 (!%p207_p3), %729, %v264_v2   ;;  %730 = vset.pattern.permute.xlu1 (!%p207_p3), %v763_v1  ;;  %v410_v11 = vld [vmem:[%s910_s4] sm:$0xff] (!%p207_p3)  ;;  %v412_v14 = vld [vmem:[%s910_s4 + $0x10] sm:$0xff] (!%p207_p3)  ;;  %v413_v15 = vld [vmem:[%s910_s4 + $0x18] sm:$0xff] (!%p207_p3) }
   0x9   : > { %280 = vperm.xlu1 (!%p207_p3), %730, %v266_v3   ;;  %v261_v16 = vld [vmem:[%s907_s1 + $0x8] sm:$0xff] (!%p207_p3)  ;;  %v262_v17 = vld [vmem:[%s907_s1 + $0x10] sm:$0xff] (!%p207_p3)  ;;  %v263_v18 = vld [vmem:[%s907_s1 + $0x18] sm:$0xff] (!%p207_p3) }
   0xa   : > { %v406_v19 = vld [vmem:[%s909_s3] sm:$0xff] (!%p207_p3)  ;;  %v407_v54 = vld [vmem:[%s909_s3 + $0x8] sm:$0xff] (!%p207_p3)  ;;  %v408_v55 = vld [vmem:[%s909_s3 + $0x10] sm:$0xff] (!%p207_p3) }
   0xb   : > { %682 = vmatprep.mubr.msk.f32.mxu1 (!%p207_p3), %vm288_vm0, %v406_v19  ;;  %v409_v56 = vld [vmem:[%s909_s3 + $0x18] sm:$0xff] (!%p207_p3) }
   0xc   : > { %275 = vperm.xlu0 (!%p207_p3), %729, %v265_v4  }
   0xd   : > { %285 = vperm.xlu1 (!%p207_p3), %730, %v267_v5  }
   0xe   : > { %s917_s18 = smov (!%p240_p4, %s753_s18), 1 }
   0xf   : > { %s642_s30 = sshll.u32 %s917_s18, 5 }
  0x10   : > { %s247_s10 = scalar_lea.vmem %s906_s0, %s642_s30  ;;  %416 = vperm.xlu0 %729, %v410_v11   ;;  %s255_s15 = scalar_lea.vmem %s911_s5, %s642_s30 }
  0x11   : > { %v836_v6 = vld [vmem:[%s247_s10] sm:$0xff]  ;;  %v838_v7 = vld [vmem:[%s247_s10 + $0x8] sm:$0xff]  ;;  %v840_v8 = vld [vmem:[%s247_s10 + $0x10] sm:$0xff]  ;;  %421 = vperm.xlu1 %730, %v411_v13  }
  0x12   : > { %v688_v9 = vpack.c.bf16 %v838_v7, %v836_v6  ;;  %v844_v10 = vld [vmem:[%s247_s10 + $0x18] sm:$0xff] }
  0x13   : > { %v692_v12 = vpack.c.bf16 %v844_v10, %v840_v8 }
  0x14   : > { %689 = vmatprep.subr.bf16.mxu0 %v688_v9  ;;  %426 = vperm.xlu0 %729, %v412_v14  }
  0x15   : > { %691 = vmatpush3.bf16.msra.mxu0 %v688_v9  ;;  %431 = vperm.xlu1 %730, %v413_v15  }
  0x16   : > { %693 = vmatprep.subr.bf16.mxu0 %v692_v12 }
  0x19   : > { %695 = vmatpush3.bf16.msra.mxu0 %v692_v12 }
  0x1c   : > { %669 = vmatmul.mubr.msk.f32.vlgmr.msra.gmra.mrb[0].mxu0 %vm288_vm0, %v261_v16 }
  0x1d   : > { %671 = vmatprep.mubr.msk.f32.mxu0 %vm288_vm0, %v262_v17 }
  0x20   : > { %672 = vmatmul.mubr.msk.f32.gmra.mrb[2].mxu0 %vm288_vm0, %v263_v18 }
  0x87   : > { %v271_v20 = vpop.permute.xlu0 %270 }
  0x88   : > { %v281_v21 = vpop.permute.xlu1 %280 }
  0x8b   : > { %v276_v22 = vpop.permute.xlu0 %275 }
  0x8c   : > { %v286_v28 = vpop.permute.xlu1 %285 }
  0x8f   : > { %v417_v58 = vpop.permute.xlu0 %416 }
  0x90   : > { %v422_v57 = vpop.permute.xlu1 %421 }
  0x93   : > { %v427_v3 = vpop.permute.xlu0 %426 }
  0x94   : > { %v432_v0 = vpop.permute.xlu1 %431 }
  0xef   : > { %v670_v23 = vpop.f32.mrb[0].mxu0 }
  0xf0   : > { %v373_v24 = vadd.f32 %v670_v23, %v276_v22  ;;  %v367_v25 = vpop.f32.mrb[1].mxu0 }
  0xf1   : > { %v368_v26 = vadd.f32 %v367_v25, %v271_v20 }
  0xf2   : > { %v391_v27 = vmul.f32 0.70710677, %v373_v24  ;;  %v387_v38 = vmul.f32 0.5, %v373_v24 }
  0xf3   : > { %v390_v29 = vmul.f32 0.70710677, %v368_v26  ;;  %v673_v30 = vpop.f32.mrb[2].mxu0  ;;  %v386_v40 = vmul.f32 0.5, %v368_v26 }
  0xf4   : > { %731 = verf.f32 %v391_v27  ;;  %v383_v31 = vadd.f32 %v673_v30, %v286_v28  ;;  %v377_v32 = vpop.f32.mrb[3].mxu0 }
  0xf5   : > { %733 = verf.f32 %v390_v29  ;;  %v378_v33 = vadd.f32 %v377_v32, %v281_v21 }
  0xf6   : > { %v393_v34 = vmul.f32 0.70710677, %v383_v31  ;;  %v389_v46 = vmul.f32 0.5, %v383_v31 }
  0xf7   : > { %v392_v35 = vmul.f32 0.70710677, %v378_v33  ;;  %v388_v48 = vmul.f32 0.5, %v378_v33 }
  0xf8   : > { %735 = verf.f32 %v393_v34 }
  0xf9   : > { %737 = verf.f32 %v392_v35 }
  0xfe   : > { %v732_v36 = vpop.eup %731 }
  0xff   : > { %v734_v37 = vpop.eup %733  ;;  %v399_v39 = vadd.f32 1.0, %v732_v36 }
 0x100   : > { %v398_v41 = vadd.f32 1.0, %v734_v37 }
 0x101   : > { %v403_v42 = vmul.f32 %v399_v39, %v387_v38 }
 0x102   : > { %v736_v43 = vpop.eup %735  ;;  %v402_v44 = vmul.f32 %v398_v41, %v386_v40 }
 0x103   : > { %v738_v45 = vpop.eup %737  ;;  %v401_v47 = vadd.f32 1.0, %v736_v43 }
 0x104   : > { %v400_v49 = vadd.f32 1.0, %v738_v45  ;;  %v696_v50 = vpack.c.bf16 %v403_v42, %v402_v44 }
 0x105   : > { %v405_v51 = vmul.f32 %v401_v47, %v389_v46 }
 0x106   : > { %v404_v52 = vmul.f32 %v400_v49, %v388_v48  ;;  %697 = vmatprep.subr.bf16.mxu1 %v696_v50 }
 0x107   : > { %699 = vmatpush3.bf16.msra.mxu1 %v696_v50 }
 0x108   : > { %v700_v53 = vpack.c.bf16 %v405_v51, %v404_v52 }
 0x10a   : > { %701 = vmatprep.subr.bf16.mxu1 %v700_v53 }
 0x10b   : > { %703 = vmatpush3.bf16.msra.mxu1 %v700_v53 }
 0x10e   : > { %683 = vmatmul.mubr.msk.f32.vlgmr.msra.gmra.mrb[0].mxu1 %vm288_vm0, %v407_v54 }
 0x10f   : > { %685 = vmatprep.mubr.msk.f32.mxu1 %vm288_vm0, %v408_v55 }
 0x112   : > { %686 = vmatmul.mubr.msk.f32.gmra.mrb[2].mxu1 %vm288_vm0, %v409_v56 }
 0x1e1   : > { %v684_v59 = vpop.f32.mrb[0].mxu1 }
 0x1e2   : > { %v518_v60 = vadd.f32 %v684_v59, %v422_v57  ;;  %v512_v61 = vpop.f32.mrb[1].mxu1 }
 0x1e3   : > { %v513_v62 = vadd.f32 %v512_v61, %v417_v58 }
 0x1e4   : > { %v532_v63 = vadd.f32 %v518_v60, %v838_v7 }
 0x1e5   : > { %v531_v1 = vadd.f32 %v513_v62, %v836_v6  ;;  %v687_v2 = vpop.f32.mrb[2].mxu1 }
 0x1e6   : > { %537 = vst.msk [vmem:[%s255_s15 + $0x8] sm:$0xff] %vm535_vm1, %v532_v63  ;;  %v528_v4 = vadd.f32 %v687_v2, %v432_v0  ;;  %v522_v5 = vpop.f32.mrb[3].mxu1 }
 0x1e7   : > { %536 = vst.msk [vmem:[%s255_s15] sm:$0xff] %vm535_vm1, %v531_v1  ;;  %v523_v9 = vadd.f32 %v522_v5, %v427_v3 }
 0x1e8   : > { %v534_v11 = vadd.f32 %v528_v4, %v844_v10 }
 0x1e9   : > { %v533_v12 = vadd.f32 %v523_v9, %v840_v8 }
 0x1ea   : > { %539 = vst.msk [vmem:[%s255_s15 + $0x18] sm:$0xff] %vm535_vm1, %v534_v11 }
 0x1eb   : > { %538 = vst.msk [vmem:[%s255_s15 + $0x10] sm:$0xff] %vm535_vm1, %v533_v12 }
 0x1ec PF: > { %s15_s20 = sadd.s32 1, %s761_s20   ;;  %s912_s18 = smov %s757_s19 }
 0x1ed   : > { %p12_p5 = scmp.ge.s32.totalorder %s15_s20, 4   ;;  %s913_s19 = smov %s915_s21 }
 0x1ef   :  { %14 = sbr.rel (!%p12_p5) target bundleno = 2 (0x2), region = 70 }

</bundles_post_ra>
